<compile_context>
chip_gen: v7x
topology: tpu7x:2x2x1
jax: 0.10.0
libtpu: 0.0.40
codegen_flags: <defaults>
</compile_context>

<pallas_src>
import jax
import jax.numpy as jnp
from jax import lax
from jax.experimental import pallas as pl
from jax.experimental.pallas import tpu as pltpu


def rnn_seq_kernel(x_ref, wx_ref, wh_ref, b_ref, h0_ref, o_ref, h_scr):
    """One grid step == one block of TT RNN time steps.

    x_ref : [TT, B, E] f32   input slice for this time block
    wx_ref: [E, H]     bf16  input->hidden weight  (resident across the grid)
    wh_ref: [H, H]     bf16  hidden->hidden weight (resident across the grid)
    b_ref : [1, H]     f32   bias
    h0_ref: [B, H]     f32   initial hidden state (used only at block 0)
    o_ref : [TT, B, H] f32   h_t for every timestep in this block
    h_scr : [B, H]     f32   VMEM-resident hidden-state carry
    """
    @pl.when(pl.program_id(0) == 0)
    def _():
        h_scr[...] = h0_ref[...]

    TT, B, E = x_ref.shape
    H = wh_ref.shape[1]

    # Hoisted input projection: one large-M MXU dot for the whole time block.
    # x is cast f32 -> bf16 in-kernel (VPU, free slot) — no wrapper-side cast.
    x_blk = x_ref[...].reshape(TT * B, E).astype(jnp.bfloat16)
    xproj = jnp.dot(x_blk, wx_ref[...], preferred_element_type=jnp.float32)

    # Stage (xproj + bias) into the output VMEM block; each row is overwritten
    # with the final h_t below, before the block is written back to HBM.
    o_ref[...] = xproj.reshape(TT, B, H) + b_ref[...]

    wh = wh_ref[...]  # load once; stays in vregs across the unrolled loop

    def step(t, h):
        # Serial critical path per step: one (B x H x H) MXU dot + add + tanh.
        acc = o_ref[t] + jnp.dot(h.astype(jnp.bfloat16), wh,
                                 preferred_element_type=jnp.float32)
        ht = jnp.tanh(acc)                  # f32 epilogue (EUP) — v5e-safe
        o_ref[t] = ht
        return ht

    h_scr[...] = lax.fori_loop(0, TT, step, h_scr[...], unroll=True)


def _pick_time_block(T, max_tt=64):
    """Largest divisor of T that is <= max_tt (so the grid tiles T exactly)."""
    tt = min(T, max_tt)
    while T % tt:
        tt -= 1
    return tt


def rnn_sequence_forward(x_seq, h0, w_x, w_h, bias, *, max_time_block=64):
    """Run RNNCell over a whole [T, B, n_embd] sequence in ONE pallas_call.

    x_seq: [T, B, n_embd] f32 ; h0: [B, n_embd2] f32
    w_x:   [n_embd,  n_embd2]  (== nn.Linear weight[:, :n_embd].T)
    w_h:   [n_embd2, n_embd2]  (== nn.Linear weight[:, n_embd:].T)
    bias:  [n_embd2]
    Returns h_all: [T, B, n_embd2] f32, where h_all[t] == h_t.
    """
    T, B, E = x_seq.shape
    H = w_h.shape[1]
    TT = _pick_time_block(T, max_time_block)
    n_blocks = T // TT

    x_seq = x_seq.astype(jnp.float32)       # stream f32; cast happens in-kernel
    wx_bf16 = w_x.astype(jnp.bfloat16)      # small, loaded once -> wrapper cast OK
    wh_bf16 = w_h.astype(jnp.bfloat16)
    bias2d = bias.reshape(1, H).astype(jnp.float32)
    h0 = h0.astype(jnp.float32)

    grid_spec = pltpu.PrefetchScalarGridSpec(
        num_scalar_prefetch=0,
        grid=(n_blocks,),
        in_specs=[
            pl.BlockSpec((TT, B, E), lambda i: (i, 0, 0)),  # per-block x slice
            pl.BlockSpec((E, H), lambda i: (0, 0)),         # weights resident
            pl.BlockSpec((H, H), lambda i: (0, 0)),
            pl.BlockSpec((1, H), lambda i: (0, 0)),
            pl.BlockSpec((B, H), lambda i: (0, 0)),
        ],
        out_specs=pl.BlockSpec((TT, B, H), lambda i: (i, 0, 0)),
        scratch_shapes=[pltpu.VMEM((B, H), jnp.float32)],
    )

    return pl.pallas_call(
        rnn_seq_kernel,
        out_shape=jax.ShapeDtypeStruct((T, B, H), jnp.float32),
        grid_spec=grid_spec,
        compiler_params=pltpu.CompilerParams(
            # The time-block axis is a recurrence -> must run sequentially.
            dimension_semantics=("arbitrary",),
        ),
    )(x_seq, wx_bf16, wh_bf16, bias2d, h0)


def rnn_cell_forward(xt, hprev, w_x, w_h, bias):
    """Single-step RNNCell.forward(xt, hprev) == the fused kernel with T=1."""
    return rnn_sequence_forward(xt[None], hprev, w_x, w_h, bias)[0]


if __name__ == "__main__":
    # Small but lane/sublane-dense shapes: n_embd=64, n_embd2=128, batch=8, T=8.
    n_embd, n_embd2, batch, seq = 64, 128, 8, 8
    d_in = n_embd + n_embd2

    key = jax.random.PRNGKey(0)
    k_x, k_h, k_w, k_b = jax.random.split(key, 4)

    x_seq = jax.random.normal(k_x, (seq, batch, n_embd), dtype=jnp.float32)
    h0 = jax.random.normal(k_h, (batch, n_embd2), dtype=jnp.float32)

    # nn.Linear(d_in, n_embd2).weight is [n_embd2, d_in]; store its transpose
    # split into the x-part and h-part so the kernel never needs a concat.
    bound = 1.0 / (d_in ** 0.5)
    weight_t = jax.random.uniform(k_w, (d_in, n_embd2), jnp.float32, -bound, bound)
    w_x, w_h = weight_t[:n_embd], weight_t[n_embd:]
    bias = jax.random.uniform(k_b, (n_embd2,), jnp.float32, -bound, bound)

    h_all = rnn_sequence_forward(x_seq, h0, w_x, w_h, bias)
    jax.block_until_ready(h_all)
    assert h_all.shape == (seq, batch, n_embd2)

    # Reference 1: same math/order as the kernel (bf16 operands, f32 acc/tanh).
    wx_b, wh_b = w_x.astype(jnp.bfloat16), w_h.astype(jnp.bfloat16)
    h = h0
    refs = []
    for t in range(seq):
        xp = jnp.dot(x_seq[t].astype(jnp.bfloat16), wx_b,
                     preferred_element_type=jnp.float32) + bias
        acc = xp + jnp.dot(h.astype(jnp.bfloat16), wh_b,
                           preferred_element_type=jnp.float32)
        h = jnp.tanh(acc)
        refs.append(h)
    ref_bf16 = jnp.stack(refs)
    assert jnp.allclose(h_all, ref_bf16, atol=1e-4, rtol=1e-4)

    # Reference 2: the literal PyTorch-module semantics in full f32
    # (tanh(cat([xt, hprev], dim=1) @ W_t + b)) — confirms the split-dot rewrite.
    h = h0
    refs = []
    for t in range(seq):
        h = jnp.tanh(jnp.concatenate([x_seq[t], h], axis=1) @ weight_t + bias)
        refs.append(h)
    ref_f32 = jnp.stack(refs)
    assert jnp.allclose(h_all, ref_f32, atol=3e-2, rtol=3e-2)

    # Single-step path (the literal RNNCell.forward signature).
    ht = rnn_cell_forward(x_seq[0], h0, w_x, w_h, bias)
    jax.block_until_ready(ht)
    assert jnp.allclose(ht, h_all[0], atol=1e-6, rtol=1e-6)

    print("KERNEL_OK")
</pallas_src>

<mosaic_0001>
module attributes {stable_mosaic.version = 11 : i64} {
  func.func @rnn_seq_kernel(%arg0: i32, %arg1: memref<8x8x64xf32, #tpu.memory_space<vmem>>, %arg2: memref<64x128xbf16, #tpu.memory_space<vmem>>, %arg3: memref<128x128xbf16, #tpu.memory_space<vmem>>, %arg4: memref<1x128xf32, #tpu.memory_space<vmem>>, %arg5: memref<8x128xf32, #tpu.memory_space<vmem>>, %arg6: memref<8x8x128xf32, #tpu.memory_space<vmem>>, %arg7: memref<8x128xf32, #tpu.memory_space<vmem>>) attributes {dimension_semantics = [#tpu.dimension_semantics<arbitrary>], iteration_bounds = array<i64: 1>, scalar_prefetch = 0 : i64, scratch_operands = 1 : i64, tpu.core_type = #tpu.core_type<tc>, window_params = [{transform_indices = @transform_0, window_bounds = array<i64: 8, 8, 64>}, {pipeline_mode = #tpu.pipeline_mode<synchronous>, transform_indices = @transform_1, window_bounds = array<i64: 64, 128>}, {pipeline_mode = #tpu.pipeline_mode<synchronous>, transform_indices = @transform_2, window_bounds = array<i64: 128, 128>}, {pipeline_mode = #tpu.pipeline_mode<synchronous>, transform_indices = @transform_3, window_bounds = array<i64: 1, 128>}, {pipeline_mode = #tpu.pipeline_mode<synchronous>, transform_indices = @transform_4, window_bounds = array<i64: 8, 128>}, {transform_indices = @transform_5, window_bounds = array<i64: 8, 8, 128>}]} {
    %c0_i32 = arith.constant 0 : i32
    %0 = arith.cmpi eq, %arg0, %c0_i32 : i32
    %1 = arith.extui %0 : i1 to i32
    %c0_i32_0 = arith.constant 0 : i32
    %2 = arith.cmpi ne, %1, %c0_i32_0 : i32
    scf.if %2 {
      %c0_57 = arith.constant 0 : index
      %c0_58 = arith.constant 0 : index
      %105 = vector.load %arg5[%c0_57, %c0_58] : memref<8x128xf32, #tpu.memory_space<vmem>>, vector<8x128xf32>
      %c0_59 = arith.constant 0 : index
      %c0_60 = arith.constant 0 : index
      %106 = vector.load %arg7[%c0_59, %c0_60] : memref<8x128xf32, #tpu.memory_space<vmem>>, vector<8x128xf32>
      tpu.vector_store %arg7[%c0_59, %c0_60], %105 {strides = array<i32>} : memref<8x128xf32, #tpu.memory_space<vmem>>, vector<8x128xf32>,
    } else {
    }
    %c0 = arith.constant 0 : index
    %c0_1 = arith.constant 0 : index
    %c0_2 = arith.constant 0 : index
    %3 = vector.load %arg1[%c0, %c0_1, %c0_2] : memref<8x8x64xf32, #tpu.memory_space<vmem>>, vector<8x8x64xf32>
    %4 = vector.shape_cast %3 : vector<8x8x64xf32> to vector<64x64xf32>
    %5 = arith.truncf %4 : vector<64x64xf32> to vector<64x64xbf16>
    %c0_3 = arith.constant 0 : index
    %c0_4 = arith.constant 0 : index
    %6 = vector.load %arg2[%c0_3, %c0_4] : memref<64x128xbf16, #tpu.memory_space<vmem>>, vector<64x128xbf16>
    %cst = arith.constant dense<0.000000e+00> : vector<64x128xf32>
    %7 = tpu.matmul %5, %6, %cst {dimension_numbers = #tpu.dot_dimension_numbers<[1], [0], [0], [1], [0, 0, 1, 1], [], []>} : vector<64x64xbf16>, vector<64x128xbf16>, vector<64x128xf32> -> vector<64x128xf32>
    %8 = vector.shape_cast %7 : vector<64x128xf32> to vector<8x8x128xf32>
    %c0_5 = arith.constant 0 : index
    %c0_6 = arith.constant 0 : index
    %9 = vector.load %arg4[%c0_5, %c0_6] : memref<1x128xf32, #tpu.memory_space<vmem>>, vector<1x128xf32>
    %10 = vector.shape_cast %9 : vector<1x128xf32> to vector<1x1x128xf32>
    %11 = vector.broadcast %10 : vector<1x1x128xf32> to vector<8x8x128xf32>
    %12 = arith.addf %8, %11 : vector<8x8x128xf32>
    %c0_7 = arith.constant 0 : index
    %c0_8 = arith.constant 0 : index
    %c0_9 = arith.constant 0 : index
    %13 = vector.load %arg6[%c0_7, %c0_8, %c0_9] : memref<8x8x128xf32, #tpu.memory_space<vmem>>, vector<8x8x128xf32>
    tpu.vector_store %arg6[%c0_7, %c0_8, %c0_9], %12 {strides = array<i32>} : memref<8x8x128xf32, #tpu.memory_space<vmem>>, vector<8x8x128xf32>,
    %c0_10 = arith.constant 0 : index
    %c0_11 = arith.constant 0 : index
    %14 = vector.load %arg3[%c0_10, %c0_11] : memref<128x128xbf16, #tpu.memory_space<vmem>>, vector<128x128xbf16>
    %c0_12 = arith.constant 0 : index
    %c0_13 = arith.constant 0 : index
    %15 = vector.load %arg7[%c0_12, %c0_13] : memref<8x128xf32, #tpu.memory_space<vmem>>, vector<8x128xf32>
    %c0_i32_14 = arith.constant 0 : i32
    %16 = arith.index_cast %c0_i32_14 : i32 to index
    %c0_15 = arith.constant 0 : index
    %c0_16 = arith.constant 0 : index
    %17 = vector.load %arg6[%16, %c0_15, %c0_16] : memref<8x8x128xf32, #tpu.memory_space<vmem>>, vector<1x8x128xf32>
    %18 = vector.shape_cast %17 : vector<1x8x128xf32> to vector<8x128xf32>
    %19 = arith.truncf %15 : vector<8x128xf32> to vector<8x128xbf16>
    %cst_17 = arith.constant dense<0.000000e+00> : vector<8x128xf32>
    %20 = tpu.matmul %19, %14, %cst_17 {dimension_numbers = #tpu.dot_dimension_numbers<[1], [0], [0], [1], [0, 0, 1, 1], [], []>} : vector<8x128xbf16>, vector<128x128xbf16>, vector<8x128xf32> -> vector<8x128xf32>
    %21 = arith.addf %18, %20 : vector<8x128xf32>
    %22 = math.tanh %21 : vector<8x128xf32>
    %23 = arith.index_cast %c0_i32_14 : i32 to index
    %c0_18 = arith.constant 0 : index
    %c0_19 = arith.constant 0 : index
    %24 = vector.load %arg6[%23, %c0_18, %c0_19] : memref<8x8x128xf32, #tpu.memory_space<vmem>>, vector<1x8x128xf32>
    %25 = vector.shape_cast %24 : vector<1x8x128xf32> to vector<8x128xf32>
    %26 = vector.shape_cast %22 : vector<8x128xf32> to vector<1x8x128xf32>
    tpu.vector_store %arg6[%23, %c0_18, %c0_19], %26 {strides = array<i32>} : memref<8x8x128xf32, #tpu.memory_space<vmem>>, vector<1x8x128xf32>,
    %c1_i32 = arith.constant 1 : i32
    %27 = arith.index_cast %c1_i32 : i32 to index
    %c0_20 = arith.constant 0 : index
    %c0_21 = arith.constant 0 : index
    %28 = vector.load %arg6[%27, %c0_20, %c0_21] : memref<8x8x128xf32, #tpu.memory_space<vmem>>, vector<1x8x128xf32>
    %29 = vector.shape_cast %28 : vector<1x8x128xf32> to vector<8x128xf32>
    %30 = arith.truncf %22 : vector<8x128xf32> to vector<8x128xbf16>
    %cst_22 = arith.constant dense<0.000000e+00> : vector<8x128xf32>
    %31 = tpu.matmul %30, %14, %cst_22 {dimension_numbers = #tpu.dot_dimension_numbers<[1], [0], [0], [1], [0, 0, 1, 1], [], []>} : vector<8x128xbf16>, vector<128x128xbf16>, vector<8x128xf32> -> vector<8x128xf32>
    %32 = arith.addf %29, %31 : vector<8x128xf32>
    %33 = math.tanh %32 : vector<8x128xf32>
    %34 = arith.index_cast %c1_i32 : i32 to index
    %c0_23 = arith.constant 0 : index
    %c0_24 = arith.constant 0 : index
    %35 = vector.load %arg6[%34, %c0_23, %c0_24] : memref<8x8x128xf32, #tpu.memory_space<vmem>>, vector<1x8x128xf32>
    %36 = vector.shape_cast %35 : vector<1x8x128xf32> to vector<8x128xf32>
    %37 = vector.shape_cast %33 : vector<8x128xf32> to vector<1x8x128xf32>
    tpu.vector_store %arg6[%34, %c0_23, %c0_24], %37 {strides = array<i32>} : memref<8x8x128xf32, #tpu.memory_space<vmem>>, vector<1x8x128xf32>,
    %c2_i32 = arith.constant 2 : i32
    %38 = arith.index_cast %c2_i32 : i32 to index
    %c0_25 = arith.constant 0 : index
    %c0_26 = arith.constant 0 : index
    %39 = vector.load %arg6[%38, %c0_25, %c0_26] : memref<8x8x128xf32, #tpu.memory_space<vmem>>, vector<1x8x128xf32>
    %40 = vector.shape_cast %39 : vector<1x8x128xf32> to vector<8x128xf32>
    %41 = arith.truncf %33 : vector<8x128xf32> to vector<8x128xbf16>
    %cst_27 = arith.constant dense<0.000000e+00> : vector<8x128xf32>
    %42 = tpu.matmul %41, %14, %cst_27 {dimension_numbers = #tpu.dot_dimension_numbers<[1], [0], [0], [1], [0, 0, 1, 1], [], []>} : vector<8x128xbf16>, vector<128x128xbf16>, vector<8x128xf32> -> vector<8x128xf32>
    %43 = arith.addf %40, %42 : vector<8x128xf32>
    %44 = math.tanh %43 : vector<8x128xf32>
    %45 = arith.index_cast %c2_i32 : i32 to index
    %c0_28 = arith.constant 0 : index
    %c0_29 = arith.constant 0 : index
    %46 = vector.load %arg6[%45, %c0_28, %c0_29] : memref<8x8x128xf32, #tpu.memory_space<vmem>>, vector<1x8x128xf32>
    %47 = vector.shape_cast %46 : vector<1x8x128xf32> to vector<8x128xf32>
    %48 = vector.shape_cast %44 : vector<8x128xf32> to vector<1x8x128xf32>
    tpu.vector_store %arg6[%45, %c0_28, %c0_29], %48 {strides = array<i32>} : memref<8x8x128xf32, #tpu.memory_space<vmem>>, vector<1x8x128xf32>,
    %c3_i32 = arith.constant 3 : i32
    %49 = arith.index_cast %c3_i32 : i32 to index
    %c0_30 = arith.constant 0 : index
    %c0_31 = arith.constant 0 : index
    %50 = vector.load %arg6[%49, %c0_30, %c0_31] : memref<8x8x128xf32, #tpu.memory_space<vmem>>, vector<1x8x128xf32>
    %51 = vector.shape_cast %50 : vector<1x8x128xf32> to vector<8x128xf32>
    %52 = arith.truncf %44 : vector<8x128xf32> to vector<8x128xbf16>
    %cst_32 = arith.constant dense<0.000000e+00> : vector<8x128xf32>
    %53 = tpu.matmul %52, %14, %cst_32 {dimension_numbers = #tpu.dot_dimension_numbers<[1], [0], [0], [1], [0, 0, 1, 1], [], []>} : vector<8x128xbf16>, vector<128x128xbf16>, vector<8x128xf32> -> vector<8x128xf32>
    %54 = arith.addf %51, %53 : vector<8x128xf32>
    %55 = math.tanh %54 : vector<8x128xf32>
    %56 = arith.index_cast %c3_i32 : i32 to index
    %c0_33 = arith.constant 0 : index
    %c0_34 = arith.constant 0 : index
    %57 = vector.load %arg6[%56, %c0_33, %c0_34] : memref<8x8x128xf32, #tpu.memory_space<vmem>>, vector<1x8x128xf32>
    %58 = vector.shape_cast %57 : vector<1x8x128xf32> to vector<8x128xf32>
    %59 = vector.shape_cast %55 : vector<8x128xf32> to vector<1x8x128xf32>
    tpu.vector_store %arg6[%56, %c0_33, %c0_34], %59 {strides = array<i32>} : memref<8x8x128xf32, #tpu.memory_space<vmem>>, vector<1x8x128xf32>,
    %c4_i32 = arith.constant 4 : i32
    %60 = arith.index_cast %c4_i32 : i32 to index
    %c0_35 = arith.constant 0 : index
    %c0_36 = arith.constant 0 : index
    %61 = vector.load %arg6[%60, %c0_35, %c0_36] : memref<8x8x128xf32, #tpu.memory_space<vmem>>, vector<1x8x128xf32>
    %62 = vector.shape_cast %61 : vector<1x8x128xf32> to vector<8x128xf32>
    %63 = arith.truncf %55 : vector<8x128xf32> to vector<8x128xbf16>
    %cst_37 = arith.constant dense<0.000000e+00> : vector<8x128xf32>
    %64 = tpu.matmul %63, %14, %cst_37 {dimension_numbers = #tpu.dot_dimension_numbers<[1], [0], [0], [1], [0, 0, 1, 1], [], []>} : vector<8x128xbf16>, vector<128x128xbf16>, vector<8x128xf32> -> vector<8x128xf32>
    %65 = arith.addf %62, %64 : vector<8x128xf32>
    %66 = math.tanh %65 : vector<8x128xf32>
    %67 = arith.index_cast %c4_i32 : i32 to index
    %c0_38 = arith.constant 0 : index
    %c0_39 = arith.constant 0 : index
    %68 = vector.load %arg6[%67, %c0_38, %c0_39] : memref<8x8x128xf32, #tpu.memory_space<vmem>>, vector<1x8x128xf32>
    %69 = vector.shape_cast %68 : vector<1x8x128xf32> to vector<8x128xf32>
    %70 = vector.shape_cast %66 : vector<8x128xf32> to vector<1x8x128xf32>
    tpu.vector_store %arg6[%67, %c0_38, %c0_39], %70 {strides = array<i32>} : memref<8x8x128xf32, #tpu.memory_space<vmem>>, vector<1x8x128xf32>,
    %c5_i32 = arith.constant 5 : i32
    %71 = arith.index_cast %c5_i32 : i32 to index
    %c0_40 = arith.constant 0 : index
    %c0_41 = arith.constant 0 : index
    %72 = vector.load %arg6[%71, %c0_40, %c0_41] : memref<8x8x128xf32, #tpu.memory_space<vmem>>, vector<1x8x128xf32>
    %73 = vector.shape_cast %72 : vector<1x8x128xf32> to vector<8x128xf32>
    %74 = arith.truncf %66 : vector<8x128xf32> to vector<8x128xbf16>
    %cst_42 = arith.constant dense<0.000000e+00> : vector<8x128xf32>
    %75 = tpu.matmul %74, %14, %cst_42 {dimension_numbers = #tpu.dot_dimension_numbers<[1], [0], [0], [1], [0, 0, 1, 1], [], []>} : vector<8x128xbf16>, vector<128x128xbf16>, vector<8x128xf32> -> vector<8x128xf32>
    %76 = arith.addf %73, %75 : vector<8x128xf32>
    %77 = math.tanh %76 : vector<8x128xf32>
    %78 = arith.index_cast %c5_i32 : i32 to index
    %c0_43 = arith.constant 0 : index
    %c0_44 = arith.constant 0 : index
    %79 = vector.load %arg6[%78, %c0_43, %c0_44] : memref<8x8x128xf32, #tpu.memory_space<vmem>>, vector<1x8x128xf32>
    %80 = vector.shape_cast %79 : vector<1x8x128xf32> to vector<8x128xf32>
    %81 = vector.shape_cast %77 : vector<8x128xf32> to vector<1x8x128xf32>
    tpu.vector_store %arg6[%78, %c0_43, %c0_44], %81 {strides = array<i32>} : memref<8x8x128xf32, #tpu.memory_space<vmem>>, vector<1x8x128xf32>,
    %c6_i32 = arith.constant 6 : i32
    %82 = arith.index_cast %c6_i32 : i32 to index
    %c0_45 = arith.constant 0 : index
    %c0_46 = arith.constant 0 : index
    %83 = vector.load %arg6[%82, %c0_45, %c0_46] : memref<8x8x128xf32, #tpu.memory_space<vmem>>, vector<1x8x128xf32>
    %84 = vector.shape_cast %83 : vector<1x8x128xf32> to vector<8x128xf32>
    %85 = arith.truncf %77 : vector<8x128xf32> to vector<8x128xbf16>
    %cst_47 = arith.constant dense<0.000000e+00> : vector<8x128xf32>
    %86 = tpu.matmul %85, %14, %cst_47 {dimension_numbers = #tpu.dot_dimension_numbers<[1], [0], [0], [1], [0, 0, 1, 1], [], []>} : vector<8x128xbf16>, vector<128x128xbf16>, vector<8x128xf32> -> vector<8x128xf32>
    %87 = arith.addf %84, %86 : vector<8x128xf32>
    %88 = math.tanh %87 : vector<8x128xf32>
    %89 = arith.index_cast %c6_i32 : i32 to index
    %c0_48 = arith.constant 0 : index
    %c0_49 = arith.constant 0 : index
    %90 = vector.load %arg6[%89, %c0_48, %c0_49] : memref<8x8x128xf32, #tpu.memory_space<vmem>>, vector<1x8x128xf32>
    %91 = vector.shape_cast %90 : vector<1x8x128xf32> to vector<8x128xf32>
    %92 = vector.shape_cast %88 : vector<8x128xf32> to vector<1x8x128xf32>
    tpu.vector_store %arg6[%89, %c0_48, %c0_49], %92 {strides = array<i32>} : memref<8x8x128xf32, #tpu.memory_space<vmem>>, vector<1x8x128xf32>,
    %c7_i32 = arith.constant 7 : i32
    %93 = arith.index_cast %c7_i32 : i32 to index
    %c0_50 = arith.constant 0 : index
    %c0_51 = arith.constant 0 : index
    %94 = vector.load %arg6[%93, %c0_50, %c0_51] : memref<8x8x128xf32, #tpu.memory_space<vmem>>, vector<1x8x128xf32>
    %95 = vector.shape_cast %94 : vector<1x8x128xf32> to vector<8x128xf32>
    %96 = arith.truncf %88 : vector<8x128xf32> to vector<8x128xbf16>
    %cst_52 = arith.constant dense<0.000000e+00> : vector<8x128xf32>
    %97 = tpu.matmul %96, %14, %cst_52 {dimension_numbers = #tpu.dot_dimension_numbers<[1], [0], [0], [1], [0, 0, 1, 1], [], []>} : vector<8x128xbf16>, vector<128x128xbf16>, vector<8x128xf32> -> vector<8x128xf32>
    %98 = arith.addf %95, %97 : vector<8x128xf32>
    %99 = math.tanh %98 : vector<8x128xf32>
    %100 = arith.index_cast %c7_i32 : i32 to index
    %c0_53 = arith.constant 0 : index
    %c0_54 = arith.constant 0 : index
    %101 = vector.load %arg6[%100, %c0_53, %c0_54] : memref<8x8x128xf32, #tpu.memory_space<vmem>>, vector<1x8x128xf32>
    %102 = vector.shape_cast %101 : vector<1x8x128xf32> to vector<8x128xf32>
    %103 = vector.shape_cast %99 : vector<8x128xf32> to vector<1x8x128xf32>
    tpu.vector_store %arg6[%100, %c0_53, %c0_54], %103 {strides = array<i32>} : memref<8x8x128xf32, #tpu.memory_space<vmem>>, vector<1x8x128xf32>,
    %c8_i32 = arith.constant 8 : i32
    %c0_55 = arith.constant 0 : index
    %c0_56 = arith.constant 0 : index
    %104 = vector.load %arg7[%c0_55, %c0_56] : memref<8x128xf32, #tpu.memory_space<vmem>>, vector<8x128xf32>
    tpu.vector_store %arg7[%c0_55, %c0_56], %99 {strides = array<i32>} : memref<8x128xf32, #tpu.memory_space<vmem>>, vector<8x128xf32>,
    return
  }
  func.func @transform_0(%arg0: i32) -> (i32, i32, i32) {
    %c0_i32 = arith.constant 0 : i32
    %c0_i32_0 = arith.constant 0 : i32
    %c0_i32_1 = arith.constant 0 : i32
    return %arg0, %c0_i32, %c0_i32_0 : i32, i32, i32
  }
  func.func @transform_1(%arg0: i32) -> (i32, i32) {
    %c0_i32 = arith.constant 0 : i32
    %c0_i32_0 = arith.constant 0 : i32
    %c0_i32_1 = arith.constant 0 : i32
    return %c0_i32, %c0_i32_0 : i32, i32
  }
  func.func @transform_2(%arg0: i32) -> (i32, i32) {
    %c0_i32 = arith.constant 0 : i32
    %c0_i32_0 = arith.constant 0 : i32
    %c0_i32_1 = arith.constant 0 : i32
    return %c0_i32, %c0_i32_0 : i32, i32
  }
  func.func @transform_3(%arg0: i32) -> (i32, i32) {
    %c0_i32 = arith.constant 0 : i32
    %c0_i32_0 = arith.constant 0 : i32
    %c0_i32_1 = arith.constant 0 : i32
    return %c0_i32, %c0_i32_0 : i32, i32
  }
  func.func @transform_4(%arg0: i32) -> (i32, i32) {
    %c0_i32 = arith.constant 0 : i32
    %c0_i32_0 = arith.constant 0 : i32
    %c0_i32_1 = arith.constant 0 : i32
    return %c0_i32, %c0_i32_0 : i32, i32
  }
  func.func @transform_5(%arg0: i32) -> (i32, i32, i32) {
    %c0_i32 = arith.constant 0 : i32
    %c0_i32_0 = arith.constant 0 : i32
    %c0_i32_1 = arith.constant 0 : i32
    return %arg0, %c0_i32, %c0_i32_0 : i32, i32, i32
  }
}

</mosaic_0001>

<bundles_post_ra>
// kernel: tpu_custom_call.1
= control target key start
LH: loop header
LB: loop body
LE: loop exit
PB: predicated region body
PF: predicated region fallthrough
CT: control target
= control target key end

     0   :  { %10 = vsyncpa [#allocation4], 0  ;;  %s1368_s0 = inlined_call_operand.hbm [shape: f32[8,8,64], index: 0, kind: input, shape index: {}]   ;;  %s1369_s1 = inlined_call_operand.hbm [shape: bf16[64,128], index: 1, kind: input, shape index: {}]   ;;  %s1370_s2 = inlined_call_operand.hbm [shape: bf16[128,128], index: 2, kind: input, shape index: {}]   ;;  %s1371_s3 = inlined_call_operand.vmem [shape: f32[1,128], index: 3, kind: input, shape index: {}]   ;;  %s1372_s4 = inlined_call_operand.vmem [shape: f32[8,128], index: 4, kind: input, shape index: {}]   ;;  %s1373_s5 = inlined_call_operand.hbm [shape: f32[8,8,128], index: 5, kind: output, shape index: {}]  }
   0x1   :  { %11 = vsyncpa [#allocation7], 0 }
   0x2   :  { %12 = vsyncpa [#allocation5], 0  ;;  %s1070_s18 = smov [#allocation6]   ;;  %s976_s22 = scalar_lea.hbm %s1369_s1, 512 }
   0x3   :  { %s30_s19 = sshll.u32 %s1070_s18, 4  ;;  %p977_p0 = scmp.ne.s32.totalorder %s1369_s1, %s976_s22  ;;  %s31_s19 = int_to_ptr.vmem [resolvable:$true] %s30_s19 }
   0x4   :  { %p980_p1 = scmp.lt.u32.totalorder %s976_s22, %s1369_s1 }
   0x6   :  { %p982_p2 = pnand %p980_p1, %p977_p0 }
   0x8   :  { %985 = shalt.err (!%p982_p2)
}
   0x9   :  { %s986_s27 = scalar_lea.vmem %s31_s19, 512  ;;  %p991_p4 = scmp.lt.s32.totalorder %s31_s19, %s31_s19 }
   0xa   :  { %p987_p3 = scmp.ne.s32.totalorder %s31_s19, %s986_s27  ;;  %p992_p5 = scmp.lt.s32.totalorder %s986_s27, %s986_s27 }
   0xc   :  { %p993_p6 = por %p992_p5, %p991_p4 }
   0xe   :  { %p994_p7 = pnand %p993_p6, %p987_p3 }
  0x10   :  { %997 = shalt.err (!%p994_p7)
}
  0x11   :  { %s1071_s28 = smov 64   ;;  %s1072_s29 = smov 4  }
  0x12   :  { %36 = dma.hbm_to_vmem [thread:$0]  %s1369_s1, 512, %s31_s19, [#allocation7], %s1071_s28, %s1071_s28, %s1072_s29  }
  0x13   :  { %s1073_s7 = smov [#allocation3]   ;;  %s998_s11 = scalar_lea.hbm %s1368_s0, 1024 }
  0x14   :  { %s18_s8 = sshll.u32 %s1073_s7, 4  ;;  %p999_p8 = scmp.ne.s32.totalorder %s1368_s0, %s998_s11  ;;  %s19_s8 = int_to_ptr.vmem [resolvable:$true] %s18_s8 }
  0x15   :  { %p1002_p9 = scmp.lt.u32.totalorder %s998_s11, %s1368_s0 }
  0x17   :  { %p1004_p10 = pnand %p1002_p9, %p999_p8 }
  0x19   :  { %1007 = shalt.err (!%p1004_p10)
}
  0x1a   :  { %s1008_s16 = scalar_lea.vmem %s19_s8, 1024  ;;  %p1013_p12 = scmp.lt.s32.totalorder %s19_s8, %s19_s8 }
  0x1b   :  { %p1009_p11 = scmp.ne.s32.totalorder %s19_s8, %s1008_s16  ;;  %p1014_p13 = scmp.lt.s32.totalorder %s1008_s16, %s1008_s16 }
  0x1d   :  { %p1015_p0 = por %p1014_p13, %p1013_p12 }
  0x1f   :  { %p1016_p1 = pnand %p1015_p0, %p1009_p11 }
  0x21   :  { %1019 = shalt.err (!%p1016_p1)
}
  0x22   :  { %s1074_s1 = smov 128   ;;  %s1075_s17 = smov 8  }
  0x23   :  { %24 = dma.hbm_to_vmem [thread:$0]  %s1368_s0, 1024, %s19_s8, [#allocation4], %s1074_s1, %s1074_s1, %s1075_s17  }
  0x24   :  { %s1076_s20 = smov [#allocation8]   ;;  %s1020_s24 = scalar_lea.hbm %s1370_s2, 1024 }
  0x25   :  { %s42_s21 = sshll.u32 %s1076_s20, 4  ;;  %p1021_p2 = scmp.ne.s32.totalorder %s1370_s2, %s1020_s24  ;;  %s43_s21 = int_to_ptr.vmem [resolvable:$true] %s42_s21 }
  0x26   :  { %p1024_p3 = scmp.lt.u32.totalorder %s1020_s24, %s1370_s2 }
  0x28   :  { %p1026_p4 = pnand %p1024_p3, %p1021_p2 }
  0x2a   :  { %1029 = shalt.err (!%p1026_p4)
}
  0x2b   :  { %s1030_s6 = scalar_lea.vmem %s43_s21, 1024  ;;  %p1035_p6 = scmp.lt.s32.totalorder %s43_s21, %s43_s21 }
  0x2c   :  { %p1031_p5 = scmp.ne.s32.totalorder %s43_s21, %s1030_s6  ;;  %p1036_p7 = scmp.lt.s32.totalorder %s1030_s6, %s1030_s6 }
  0x2e   :  { %p1037_p8 = por %p1036_p7, %p1035_p6 }
  0x30   :  { %p1038_p9 = pnand %p1037_p8, %p1031_p5 }
  0x32   :  { %1041 = shalt.err (!%p1038_p9)
}
  0x33   :  { %48 = dma.hbm_to_vmem [thread:$0]  %s1370_s2, 1024, %s43_s21, [#allocation7], %s1071_s28, %s1071_s28, %s1072_s29  }
  0x34   :  { %1064 = dma.done.wait [#allocation4], 1024  }
  0x35   :  { %1065 = vsyncadd [#allocation4], 4294966272 }
  0x36   :  { %1066 = dma.done.wait [#allocation7], 1536  }
  0x37   :  { %1067 = vsyncadd [#allocation7], 4294965760  ;;  %v1077_v0 = vmov 0.0   ;;  %vm1078_vm0 = vmmov 0   ;;  %v1158_v1 = vld [vmem:[#allocation8] sm:$0xff]   ;;  %v1161_v3 = vld [vmem:[#allocation8 + $0x8] sm:$0xff]  }
  0x38   :  { %778 = vmatprep.subr.bf16.mxu1 %v1077_v0  ;;  %794 = vmatprep.mubr.msk.bf16.mxu1 %vm1078_vm0, %v1077_v0  ;;  %v949_v2 = vld [vmem:[#allocation6] sm:$0xff]   ;;  %v951_v4 = vld [vmem:[#allocation6 + $0x8] sm:$0xff]   ;;  %v953_v5 = vld [vmem:[#allocation6 + $0x10] sm:$0xff]   ;;  %vm113_vm1 = vcmask 523264  }
  0x39   :  { %779 = vmatpush3.bf16.msra.mxu1 %v1158_v1  ;;  %762 = vmatprep.subr.bf16.mxu0 %v949_v2  ;;  %v1165_v6 = vld [vmem:[#allocation8 + $0x10] sm:$0xff]   ;;  %v69_v7 = vld [vmem:[#allocation3] sm:$0xff]  ;;  %v70_v8 = vld [vmem:[#allocation3 + $0x8] sm:$0xff] }
  0x3a   :  { %780 = vmatprep.subr.bf16.mxu1 %v1077_v0  ;;  %763 = vmatpush3.bf16.msra.mxu0 %v949_v2  ;;  %v955_v9 = vld [vmem:[#allocation6 + $0x18] sm:$0xff]   ;;  %v77_v10 = vpack.c.bf16 %v70_v8, %v69_v7  ;;  %v71_v12 = vld [vmem:[#allocation3 + $0x10] sm:$0xff]  ;;  %v1174_v14 = vld [vmem:[#allocation8 + $0x20] sm:$0xff]  }
  0x3b   :  { %764 = vmatprep.subr.bf16.mxu0 %v951_v4  ;;  %v1169_v11 = vld [vmem:[#allocation8 + $0x18] sm:$0xff]   ;;  %v1179_v16 = vld [vmem:[#allocation8 + $0x28] sm:$0xff]   ;;  %v1186_v17 = vld [vmem:[#allocation8 + $0x30] sm:$0xff]  }
  0x3c   :  { %770 = vmatprep.mubr.msk.bf16.mxu0 %vm113_vm1, %v77_v10  ;;  %v72_v13 = vld [vmem:[#allocation3 + $0x18] sm:$0xff]  ;;  %v67_v19 = vld [vmem:[%s1372_s4] sm:$0xff]  ;;  %v74_v22 = vld [vmem:[#allocation3 + $0x28] sm:$0xff] }
  0x3d   :  { %781 = vmatpush3.bf16.msra.mxu1 %v1161_v3  ;;  %v78_v15 = vpack.c.bf16 %v72_v13, %v71_v12  ;;  %v1192_v18 = vld [vmem:[#allocation8 + $0x38] sm:$0xff]   ;;  %v232_v20 = vpack.c.bf16 %v67_v19, %v67_v19  ;;  %v73_v21 = vld [vmem:[#allocation3 + $0x20] sm:$0xff]  ;;  %v75_v24 = vld [vmem:[#allocation3 + $0x30] sm:$0xff] }
  0x3e   :  { %782 = vmatprep.subr.bf16.mxu1 %v1077_v0  ;;  %765 = vmatpush3.bf16.msra.mxu0 %v951_v4  ;;  %v79_v23 = vpack.c.bf16 %v74_v22, %v73_v21  ;;  %v76_v25 = vld [vmem:[#allocation3 + $0x38] sm:$0xff]  ;;  %v1241_v31 = vld [vmem:[%s1371_s3] ss:$0 sm:$0xff]  ;;  %s1079_s3 = smov [#allocation9]  }
  0x3f   :  { %766 = vmatprep.subr.bf16.mxu0 %v953_v5  ;;  %v80_v26 = vpack.c.bf16 %v76_v25, %v75_v24  ;;  %s652_s8 = sshll.u32 %s1079_s3, 4  ;;  %s653_s8 = int_to_ptr.vmem [resolvable:$true] %s652_s8 }
  0x40   :  { %s1042_s9 = scalar_lea.vmem %s653_s8, 1024  ;;  %p1047_p11 = scmp.lt.s32.totalorder %s653_s8, %s653_s8 }
  0x41   :  { %783 = vmatpush3.bf16.msra.mxu1 %v1165_v6  ;;  %p1043_p10 = scmp.ne.s32.totalorder %s653_s8, %s1042_s9  ;;  %p1048_p12 = scmp.lt.s32.totalorder %s1042_s9, %s1042_s9 }
  0x42   :  { %784 = vmatprep.subr.bf16.mxu1 %v1077_v0  ;;  %767 = vmatpush3.bf16.msra.mxu0 %v953_v5 }
  0x43   :  { %768 = vmatprep.subr.bf16.mxu0 %v955_v9  ;;  %p1049_p13 = por %p1048_p12, %p1047_p11 }
  0x45   :  { %785 = vmatpush3.bf16.msra.mxu1 %v1169_v11  ;;  %p1050_p0 = pnand %p1049_p13, %p1043_p10 }
  0x46   :  { %786 = vmatprep.subr.bf16.mxu1 %v1077_v0  ;;  %769 = vmatpush3.bf16.msra.mxu0 %v955_v9 }
  0x47   :  { %798 = vmatprep.subr.bf16.mxu0 %v1077_v0 }
  0x49   :  { %787 = vmatpush3.bf16.msra.mxu1 %v1174_v14  ;;  %771 = vmatmul.mubr.msk.bf16.vlgmr.msra.gmra.mrb[0].mxu0 %vm113_vm1, %v78_v15 }
  0x4a   :  { %788 = vmatprep.subr.bf16.mxu1 %v1077_v0  ;;  %799 = vmatpush3.bf16.msra.mxu0 %v1158_v1 }
  0x4b   :  { %800 = vmatprep.subr.bf16.mxu0 %v1077_v0  ;;  %774 = vmatprep.mubr.msk.bf16.mxu0 %vm113_vm1, %v79_v23 }
  0x4d   :  { %789 = vmatpush3.bf16.msra.mxu1 %v1179_v16 }
  0x4e   :  { %790 = vmatprep.subr.bf16.mxu1 %v1077_v0  ;;  %801 = vmatpush3.bf16.msra.mxu0 %v1161_v3 }
  0x4f   :  { %802 = vmatprep.subr.bf16.mxu0 %v1077_v0 }
  0x51   :  { %791 = vmatpush3.bf16.msra.mxu1 %v1186_v17  ;;  %775 = vmatmul.mubr.msk.bf16.gmra.mrb[4].mxu0 %vm113_vm1, %v80_v26 }
  0x52   :  { %792 = vmatprep.subr.bf16.mxu1 %v1077_v0  ;;  %803 = vmatpush3.bf16.msra.mxu0 %v1165_v6 }
  0x53   :  { %804 = vmatprep.subr.bf16.mxu0 %v1077_v0  ;;  %814 = vmatprep.mubr.msk.bf16.mxu0 %vm1078_vm0, %v1077_v0 }
  0x55   :  { %793 = vmatpush3.bf16.msra.mxu1 %v1192_v18 }
  0x56   :  { %818 = vmatprep.subr.bf16.mxu1 %v1077_v0  ;;  %805 = vmatpush3.bf16.msra.mxu0 %v1169_v11 }
  0x57   :  { %806 = vmatprep.subr.bf16.mxu0 %v1077_v0 }
  0x58   :  { %795 = vmatmul.mubr.bf16.vlgmr.msra.gmra.mrb[0].mxu1 %v232_v20 }
  0x59   :  { %819 = vmatpush3.bf16.msra.mxu1 %v1158_v1  ;;  %834 = vmatprep.mubr.msk.bf16.mxu1 %vm1078_vm0, %v1077_v0 }
  0x5a   :  { %820 = vmatprep.subr.bf16.mxu1 %v1077_v0  ;;  %807 = vmatpush3.bf16.msra.mxu0 %v1174_v14 }
  0x5b   :  { %808 = vmatprep.subr.bf16.mxu0 %v1077_v0 }
  0x5d   :  { %821 = vmatpush3.bf16.msra.mxu1 %v1161_v3 }
  0x5e   :  { %822 = vmatprep.subr.bf16.mxu1 %v1077_v0  ;;  %809 = vmatpush3.bf16.msra.mxu0 %v1179_v16 }
  0x5f   :  { %810 = vmatprep.subr.bf16.mxu0 %v1077_v0 }
  0x61   :  { %823 = vmatpush3.bf16.msra.mxu1 %v1165_v6 }
  0x62   :  { %824 = vmatprep.subr.bf16.mxu1 %v1077_v0  ;;  %811 = vmatpush3.bf16.msra.mxu0 %v1186_v17 }
  0x63   :  { %812 = vmatprep.subr.bf16.mxu0 %v1077_v0 }
  0x65   :  { %825 = vmatpush3.bf16.msra.mxu1 %v1169_v11 }
  0x66   :  { %826 = vmatprep.subr.bf16.mxu1 %v1077_v0  ;;  %813 = vmatpush3.bf16.msra.mxu0 %v1192_v18 }
  0x67   :  { %838 = vmatprep.subr.bf16.mxu0 %v1077_v0 }
  0x69   :  { %827 = vmatpush3.bf16.msra.mxu1 %v1174_v14 }
  0x6a   :  { %828 = vmatprep.subr.bf16.mxu1 %v1077_v0 }
  0x6d   :  { %829 = vmatpush3.bf16.msra.mxu1 %v1179_v16 }
  0x6e   :  { %830 = vmatprep.subr.bf16.mxu1 %v1077_v0 }
  0x71   :  { %831 = vmatpush3.bf16.msra.mxu1 %v1186_v17 }
  0x72   :  { %832 = vmatprep.subr.bf16.mxu1 %v1077_v0 }
  0x75   :  { %833 = vmatpush3.bf16.msra.mxu1 %v1192_v18 }
  0x76   :  { %858 = vmatprep.subr.bf16.mxu1 %v1077_v0 }
 0x11c   :  { %v1234_v27 = vpop.f32.mrb[0].mxu0 }
 0x11d   :  { %v160_v28 = vpop.f32.mrb[1].mxu0  ;;  %v200_v52 = vadd.f32 %v1234_v27, %v1241_v31 }
 0x11e   :  { %v1236_v29 = vpop.f32.mrb[2].mxu0  ;;  %v198_v32 = vadd.f32 %v1241_v31, %v160_v28 }
 0x11f   :  { %v163_v30 = vpop.f32.mrb[3].mxu0  ;;  %v201_v60 = vadd.f32 %v1236_v29, %v1241_v31 }
 0x120   :  { %v199_v44 = vadd.f32 %v1241_v31, %v163_v30 }
 0x124   :  { %v1262_v40 = vpop.f32.mrb[4].mxu0 }
 0x125   :  { %v1264_v41 = vpop.f32.mrb[5].mxu0 }
 0x126   :  { %v1266_v42 = vpop.f32.mrb[6].mxu0  ;;  %v202_v8 = vadd.f32 %v1241_v31, %v1264_v41 }
 0x127   :  { %v1268_v43 = vpop.f32.mrb[7].mxu0  ;;  %v205_v28 = vadd.f32 %v1266_v42, %v1241_v31 }
 0x12b   :  { %v315_v33 = vpop.f32.mrb[0].mxu1 }
 0x12c   :  { %v321_v34 = vadd.f32 %v315_v33, %v198_v32  ;;  %v796_v35 = vpop.f32.mrb[1].mxu1 }
 0x12d   :  { %v318_v36 = vpop.f32.mrb[2].mxu1 }
 0x12e   :  { %960 = vtanh.f32 %v321_v34  ;;  %v797_v37 = vpop.f32.mrb[3].mxu1 }
 0x138   :  { %v961_v38 = vpop.eup %960 }
 0x139   :  { %323 = vst [vmem:[#allocation9] sm:$0xff] %v961_v38  ;;  %v326_v39 = vpack.c.bf16 %v961_v38, %v961_v38 }
 0x13b   :  { %815 = vmatmul.mubr.bf16.vlgmr.msra.gmra.mrb[8].mxu0 %v326_v39 }
 0x13c   :  { %839 = vmatpush3.bf16.msra.mxu0 %v1158_v1  ;;  %854 = vmatprep.mubr.msk.bf16.mxu0 %vm1078_vm0, %v1077_v0 }
 0x13d   :  { %840 = vmatprep.subr.bf16.mxu0 %v1077_v0 }
 0x140   :  { %841 = vmatpush3.bf16.msra.mxu0 %v1161_v3 }
 0x141   :  { %842 = vmatprep.subr.bf16.mxu0 %v1077_v0 }
 0x144   :  { %843 = vmatpush3.bf16.msra.mxu0 %v1165_v6 }
 0x145   :  { %844 = vmatprep.subr.bf16.mxu0 %v1077_v0 }
 0x148   :  { %845 = vmatpush3.bf16.msra.mxu0 %v1169_v11 }
 0x149   :  { %846 = vmatprep.subr.bf16.mxu0 %v1077_v0 }
 0x14c   :  { %847 = vmatpush3.bf16.msra.mxu0 %v1174_v14 }
 0x14d   :  { %848 = vmatprep.subr.bf16.mxu0 %v1077_v0 }
 0x150   :  { %849 = vmatpush3.bf16.msra.mxu0 %v1179_v16 }
 0x151   :  { %850 = vmatprep.subr.bf16.mxu0 %v1077_v0 }
 0x154   :  { %851 = vmatpush3.bf16.msra.mxu0 %v1186_v17 }
 0x155   :  { %852 = vmatprep.subr.bf16.mxu0 %v1077_v0 }
 0x158   :  { %853 = vmatpush3.bf16.msra.mxu0 %v1192_v18 }
 0x159   :  { %878 = vmatprep.subr.bf16.mxu0 %v1077_v0 }
 0x20e   :  { %v361_v45 = vpop.f32.mrb[8].mxu0 }
 0x20f   :  { %v367_v46 = vadd.f32 %v361_v45, %v199_v44  ;;  %v816_v47 = vpop.f32.mrb[9].mxu0 }
 0x210   :  { %v364_v48 = vpop.f32.mrb[10].mxu0 }
 0x211   :  { %962 = vtanh.f32 %v367_v46  ;;  %v817_v49 = vpop.f32.mrb[11].mxu0 }
 0x21b   :  { %v963_v50 = vpop.eup %962 }
 0x21c   :  { %369 = vst [vmem:[#allocation9 + $0x8] sm:$0xff] %v963_v50  ;;  %v372_v51 = vpack.c.bf16 %v963_v50, %v963_v50 }
 0x21e   :  { %835 = vmatmul.mubr.bf16.vlgmr.msra.gmra.mrb[4].mxu1 %v372_v51 }
 0x21f   :  { %859 = vmatpush3.bf16.msra.mxu1 %v1158_v1  ;;  %874 = vmatprep.mubr.msk.bf16.mxu1 %vm1078_vm0, %v1077_v0 }
 0x220   :  { %860 = vmatprep.subr.bf16.mxu1 %v1077_v0 }
 0x223   :  { %861 = vmatpush3.bf16.msra.mxu1 %v1161_v3 }
 0x224   :  { %862 = vmatprep.subr.bf16.mxu1 %v1077_v0 }
 0x227   :  { %863 = vmatpush3.bf16.msra.mxu1 %v1165_v6 }
 0x228   :  { %864 = vmatprep.subr.bf16.mxu1 %v1077_v0 }
 0x22b   :  { %865 = vmatpush3.bf16.msra.mxu1 %v1169_v11 }
 0x22c   :  { %866 = vmatprep.subr.bf16.mxu1 %v1077_v0 }
 0x22f   :  { %867 = vmatpush3.bf16.msra.mxu1 %v1174_v14 }
 0x230   :  { %868 = vmatprep.subr.bf16.mxu1 %v1077_v0 }
 0x233   :  { %869 = vmatpush3.bf16.msra.mxu1 %v1179_v16 }
 0x234   :  { %870 = vmatprep.subr.bf16.mxu1 %v1077_v0 }
 0x237   :  { %871 = vmatpush3.bf16.msra.mxu1 %v1186_v17 }
 0x238   :  { %872 = vmatprep.subr.bf16.mxu1 %v1077_v0 }
 0x23b   :  { %873 = vmatpush3.bf16.msra.mxu1 %v1192_v18 }
 0x23c   :  { %898 = vmatprep.subr.bf16.mxu1 %v1077_v0 }
 0x2f1   :  { %v407_v53 = vpop.f32.mrb[4].mxu1 }
 0x2f2   :  { %v413_v54 = vadd.f32 %v407_v53, %v200_v52  ;;  %v836_v55 = vpop.f32.mrb[5].mxu1 }
 0x2f3   :  { %v410_v56 = vpop.f32.mrb[6].mxu1 }
 0x2f4   :  { %964 = vtanh.f32 %v413_v54  ;;  %v837_v57 = vpop.f32.mrb[7].mxu1 }
 0x2fe   :  { %v965_v58 = vpop.eup %964 }
 0x2ff   :  { %415 = vst [vmem:[#allocation9 + $0x10] sm:$0xff] %v965_v58  ;;  %v418_v59 = vpack.c.bf16 %v965_v58, %v965_v58 }
 0x301   :  { %855 = vmatmul.mubr.bf16.vlgmr.msra.gmra.mrb[12].mxu0 %v418_v59 }
 0x302   :  { %879 = vmatpush3.bf16.msra.mxu0 %v1158_v1  ;;  %894 = vmatprep.mubr.msk.bf16.mxu0 %vm1078_vm0, %v1077_v0 }
 0x303   :  { %880 = vmatprep.subr.bf16.mxu0 %v1077_v0 }
 0x306   :  { %881 = vmatpush3.bf16.msra.mxu0 %v1161_v3 }
 0x307   :  { %882 = vmatprep.subr.bf16.mxu0 %v1077_v0 }
 0x30a   :  { %883 = vmatpush3.bf16.msra.mxu0 %v1165_v6 }
 0x30b   :  { %884 = vmatprep.subr.bf16.mxu0 %v1077_v0 }
 0x30e   :  { %885 = vmatpush3.bf16.msra.mxu0 %v1169_v11 }
 0x30f   :  { %886 = vmatprep.subr.bf16.mxu0 %v1077_v0 }
 0x312   :  { %887 = vmatpush3.bf16.msra.mxu0 %v1174_v14 }
 0x313   :  { %888 = vmatprep.subr.bf16.mxu0 %v1077_v0 }
 0x316   :  { %889 = vmatpush3.bf16.msra.mxu0 %v1179_v16 }
 0x317   :  { %890 = vmatprep.subr.bf16.mxu0 %v1077_v0 }
 0x31a   :  { %891 = vmatpush3.bf16.msra.mxu0 %v1186_v17 }
 0x31b   :  { %892 = vmatprep.subr.bf16.mxu0 %v1077_v0 }
 0x31e   :  { %893 = vmatpush3.bf16.msra.mxu0 %v1192_v18 }
 0x31f   :  { %918 = vmatprep.subr.bf16.mxu0 %v1077_v0 }
 0x3d4   :  { %v453_v61 = vpop.f32.mrb[12].mxu0 }
 0x3d5   :  { %v459_v62 = vadd.f32 %v453_v61, %v201_v60  ;;  %v856_v63 = vpop.f32.mrb[13].mxu0 }
 0x3d6   :  { %v456_v2 = vpop.f32.mrb[14].mxu0 }
 0x3d7   :  { %966 = vtanh.f32 %v459_v62  ;;  %v857_v4 = vpop.f32.mrb[15].mxu0 }
 0x3e1   :  { %v967_v5 = vpop.eup %966 }
 0x3e2   :  { %461 = vst [vmem:[#allocation9 + $0x18] sm:$0xff] %v967_v5  ;;  %v464_v7 = vpack.c.bf16 %v967_v5, %v967_v5 }
 0x3e4   :  { %875 = vmatmul.mubr.bf16.vlgmr.msra.gmra.mrb[8].mxu1 %v464_v7 }
 0x3e5   :  { %899 = vmatpush3.bf16.msra.mxu1 %v1158_v1  ;;  %914 = vmatprep.mubr.msk.bf16.mxu1 %vm1078_vm0, %v1077_v0 }
 0x3e6   :  { %900 = vmatprep.subr.bf16.mxu1 %v1077_v0 }
 0x3e9   :  { %901 = vmatpush3.bf16.msra.mxu1 %v1161_v3 }
 0x3ea   :  { %902 = vmatprep.subr.bf16.mxu1 %v1077_v0 }
 0x3ed   :  { %903 = vmatpush3.bf16.msra.mxu1 %v1165_v6 }
 0x3ee   :  { %904 = vmatprep.subr.bf16.mxu1 %v1077_v0 }
 0x3f1   :  { %905 = vmatpush3.bf16.msra.mxu1 %v1169_v11 }
 0x3f2   :  { %906 = vmatprep.subr.bf16.mxu1 %v1077_v0 }
 0x3f5   :  { %907 = vmatpush3.bf16.msra.mxu1 %v1174_v14 }
 0x3f6   :  { %908 = vmatprep.subr.bf16.mxu1 %v1077_v0 }
 0x3f9   :  { %909 = vmatpush3.bf16.msra.mxu1 %v1179_v16 }
 0x3fa   :  { %910 = vmatprep.subr.bf16.mxu1 %v1077_v0 }
 0x3fd   :  { %911 = vmatpush3.bf16.msra.mxu1 %v1186_v17 }
 0x3fe   :  { %912 = vmatprep.subr.bf16.mxu1 %v1077_v0 }
 0x401   :  { %913 = vmatpush3.bf16.msra.mxu1 %v1192_v18 }
 0x4b7   :  { %v499_v9 = vpop.f32.mrb[8].mxu1 }
 0x4b8   :  { %v505_v10 = vadd.f32 %v499_v9, %v202_v8  ;;  %v876_v12 = vpop.f32.mrb[9].mxu1 }
 0x4b9   :  { %v502_v13 = vpop.f32.mrb[10].mxu1 }
 0x4ba   :  { %968 = vtanh.f32 %v505_v10  ;;  %v877_v15 = vpop.f32.mrb[11].mxu1 }
 0x4c4   :  { %v969_v19 = vpop.eup %968 }
 0x4c5   :  { %507 = vst [vmem:[#allocation9 + $0x20] sm:$0xff] %v969_v19  ;;  %v510_v20 = vpack.c.bf16 %v969_v19, %v969_v19 }
 0x4c7   :  { %895 = vmatmul.mubr.bf16.vlgmr.msra.gmra.mrb[16].mxu0 %v510_v20 }
 0x4c8   :  { %919 = vmatpush3.bf16.msra.mxu0 %v1158_v1  ;;  %934 = vmatprep.mubr.msk.bf16.mxu0 %vm1078_vm0, %v1077_v0  ;;  %v203_v1 = vadd.f32 %v1241_v31, %v1268_v43 }
 0x4c9   :  { %920 = vmatprep.subr.bf16.mxu0 %v1077_v0 }
 0x4cc   :  { %921 = vmatpush3.bf16.msra.mxu0 %v1161_v3 }
 0x4cd   :  { %922 = vmatprep.subr.bf16.mxu0 %v1077_v0 }
 0x4d0   :  { %923 = vmatpush3.bf16.msra.mxu0 %v1165_v6 }
 0x4d1   :  { %924 = vmatprep.subr.bf16.mxu0 %v1077_v0 }
 0x4d4   :  { %925 = vmatpush3.bf16.msra.mxu0 %v1169_v11 }
 0x4d5   :  { %926 = vmatprep.subr.bf16.mxu0 %v1077_v0 }
 0x4d8   :  { %927 = vmatpush3.bf16.msra.mxu0 %v1174_v14 }
 0x4d9   :  { %928 = vmatprep.subr.bf16.mxu0 %v1077_v0 }
 0x4dc   :  { %929 = vmatpush3.bf16.msra.mxu0 %v1179_v16 }
 0x4dd   :  { %930 = vmatprep.subr.bf16.mxu0 %v1077_v0 }
 0x4e0   :  { %931 = vmatpush3.bf16.msra.mxu0 %v1186_v17  ;;  %v204_v17 = vadd.f32 %v1262_v40, %v1241_v31 }
 0x4e1   :  { %932 = vmatprep.subr.bf16.mxu0 %v1077_v0 }
 0x4e4   :  { %933 = vmatpush3.bf16.msra.mxu0 %v1192_v18 }
 0x59a   :  { %v545_v3 = vpop.f32.mrb[16].mxu0 }
 0x59b   :  { %v551_v6 = vadd.f32 %v545_v3, %v203_v1  ;;  %v896_v11 = vpop.f32.mrb[17].mxu0 }
 0x59c   :  { %v548_v21 = vpop.f32.mrb[18].mxu0 }
 0x59d   :  { %970 = vtanh.f32 %v551_v6  ;;  %v897_v14 = vpop.f32.mrb[19].mxu0 }
 0x5a7   :  { %v971_v22 = vpop.eup %970 }
 0x5a8   :  { %553 = vst [vmem:[#allocation9 + $0x28] sm:$0xff] %v971_v22  ;;  %v556_v16 = vpack.c.bf16 %v971_v22, %v971_v22 }
 0x5aa   :  { %915 = vmatmul.mubr.bf16.vlgmr.msra.gmra.mrb[12].mxu1 %v556_v16 }
 0x67d   :  { %v591_v23 = vpop.f32.mrb[12].mxu1 }
 0x67e   :  { %v597_v0 = vadd.f32 %v591_v23, %v204_v17  ;;  %v916_v24 = vpop.f32.mrb[13].mxu1 }
 0x67f   :  { %v594_v18 = vpop.f32.mrb[14].mxu1 }
 0x680   :  { %972 = vtanh.f32 %v597_v0  ;;  %v917_v25 = vpop.f32.mrb[15].mxu1 }
 0x68a   :  { %v973_v26 = vpop.eup %972 }
 0x68b   :  { %599 = vst [vmem:[#allocation9 + $0x30] sm:$0xff] %v973_v26  ;;  %v602_v27 = vpack.c.bf16 %v973_v26, %v973_v26 }
 0x68d   :  { %935 = vmatmul.mubr.bf16.vlgmr.msra.gmra.mrb[20].mxu0 %v602_v27 }
 0x760   :  { %v637_v29 = vpop.f32.mrb[20].mxu0 }
 0x761   :  { %v643_v30 = vadd.f32 %v637_v29, %v205_v28  ;;  %v936_v32 = vpop.f32.mrb[21].mxu0 }
 0x762   :  { %v640_v33 = vpop.f32.mrb[22].mxu0 }
 0x763   :  { %974 = vtanh.f32 %v643_v30  ;;  %v937_v34 = vpop.f32.mrb[23].mxu0 }
 0x76d   :  { %v975_v35 = vpop.eup %974 }
 0x76e   :  { %645 = vst [vmem:[#allocation9 + $0x38] sm:$0xff] %v975_v35 }
 0x76f   :  { %1053 = shalt.err (!%p1050_p0)
}
 0x770   :  { %s1054_s12 = scalar_lea.hbm %s1373_s5, 1024 }
 0x771   :  { %p1055_p1 = scmp.ne.s32.totalorder %s1373_s5, %s1054_s12  ;;  %p1058_p2 = scmp.lt.u32.totalorder %s1054_s12, %s1373_s5 }
 0x773   :  { %p1060_p3 = pnand %p1058_p2, %p1055_p1 }
 0x775   :  { %1063 = shalt.err (!%p1060_p3)
}
 0x776   :  { %658 = dma.vmem_to_hbm [thread:$0]  %s653_s8, 1024, %s1373_s5, [#allocation5], %s1074_s1, %s1074_s1, %s1075_s17  }
 0x777   :  { %1068 = dma.done.wait [#allocation5], 1024  }
 0x778   :  { %1069 = vsyncadd [#allocation5], 4294966272 }
 0x779   :  { %662 = vsyncpa [#allocation4], 1 }
 0x77a   :  { %663 = vsyncpa [#allocation7], 1 }
 0x77b   :  { %664 = vsyncpa [#allocation5], 1 }

</bundles_post_ra>
